<compile_context>
chip_gen: v5e
topology: v5e:2x2
jax: 0.10.0
libtpu: 0.0.40
codegen_flags: <defaults>
</compile_context>

<pallas_src>
import jax
import jax.numpy as jnp
from jax.experimental import pallas as pl
from jax.experimental.pallas import tpu as pltpu


def _round_up(a: int, b: int) -> int:
    return ((a + b - 1) // b) * b


_ONE_HOT_MAX_E = 512  # use the one-hot MXU path when the table has <= this many rows


def _vmem_cap_bytes() -> int:
    """Generation-aware VMEM cap (128 MiB on v5e/v6e, 64 MiB per TC on v7x)."""
    try:
        info = pltpu.get_tpu_info()
        cap = int(getattr(info, "vmem_capacity_bytes", 0) or 0)
        if cap > 0:
            return int(cap * 0.85)
    except Exception:
        pass
    return 64 * 1024 * 1024  # conservative fallback (v7x per-TC size)


def _embedding_onehot_kernel(ids_ref, w_ref, out_ref):
    # Small-E path: one MXU matmul per output tile.
    #   ids_ref: (tile_n, 1) int32, VMEM (streamed per tile)
    #   w_ref:   (E, V)      f32,   VMEM, grid-resident (pos already folded in)
    #   out_ref: (tile_n, V) f32,   VMEM output tile (full-width stores)
    e = w_ref.shape[0]
    ids = ids_ref[...]                                               # (tile_n, 1)
    iota = jax.lax.broadcasted_iota(jnp.int32, (ids.shape[0], e), 1)
    one_hot = (iota == ids).astype(w_ref.dtype)                      # (tile_n, E), exact 0/1
    out_ref[...] = jnp.dot(one_hot, w_ref[...],
                           preferred_element_type=jnp.float32)


def _embedding_gather_kernel(ids_ref, w_ref, out_ref):
    # Large-E fallback: per-row dynamic gather of the resident table.
    #   ids_ref: (tile_n,)   int32, SMEM (streamed per tile)
    #   w_ref:   (E, V)      f32,   VMEM, grid-resident (pos already folded in)
    #   out_ref: (tile_n, V) f32
    tile_n = out_ref.shape[0]
    n_rows = w_ref.shape[0]

    def body(j, carry):
        # Clamp: guards against garbage ids in a masked partial last tile.
        tok = jnp.clip(ids_ref[j], 0, n_rows - 1)
        out_ref[pl.ds(j, 1), :] = w_ref[pl.ds(tok, 1), :]
        return carry

    jax.lax.fori_loop(0, tile_n, body, 0, unroll=8)
    # TODO(synk): DMA-gather 8 rows per (8, V) store (or one-hot+MXU column tiles)
    # to escape the 1-sublane vld/vst path for very large E.


def embedding_forward(x, w_tok, w_pos, *, tile_n=1024):
    """x: (B, C, S) int token ids; w_tok: (E, V) f32; w_pos: (V, E) f32 -> (B, C, S, V) f32."""
    b, c, s = x.shape
    e, v = w_tok.shape
    # PyTorch `_pos @ weight.T` only typechecks when seq_len == num_embeddings.
    assert s == e, "seq_len must equal num_embeddings (torch matmul shape constraint)"

    # Fold the positional vector into the table once in XLA (same f32 add, hoisted):
    #   pos = arange(E) @ W_pos.T  -> (V,)   ;   w_eff[r, :] = w_tok[r, :] + pos
    pos = jnp.arange(e, dtype=jnp.float32) @ w_pos.astype(jnp.float32).T
    w_eff = w_tok.astype(jnp.float32) + pos[None, :]

    # Flat token ids; clamp (PyTorch raises on OOB, we clamp to keep reads defined).
    ids = jnp.clip(x.reshape(-1).astype(jnp.int32), 0, e - 1)
    n = ids.shape[0]

    # Row-tile the flattened (N, V) output. Keep at least 2 grid steps when
    # possible so v7x megacore splitting has work for both TensorCores.
    tile_n = max(8, _round_up(min(tile_n, n), 8))
    if pl.cdiv(n, tile_n) < 2 and n > 8:
        tile_n = max(8, _round_up(pl.cdiv(n, 2), 8))
    grid = (pl.cdiv(n, tile_n),)

    use_onehot = e <= _ONE_HOT_MAX_E

    # VMEM budget: resident table (assume the pipeline may hold 2 copies),
    # double-buffered ids + output tiles, one-hot scratch, plus headroom.
    table_bytes = 4 * e * v
    out_tile_bytes = 4 * tile_n * v
    ids_tile_bytes = 4 * tile_n * 128          # lane-padded int32 tile (generous)
    onehot_bytes = 4 * tile_n * max(e, 128) if use_onehot else 0
    vmem_bytes = (2 * table_bytes + 2 * out_tile_bytes + 2 * ids_tile_bytes
                  + onehot_bytes + (2 << 20))
    vmem_bytes = min(max(vmem_bytes, 16 << 20), _vmem_cap_bytes())

    if use_onehot:
        kernel = _embedding_onehot_kernel
        ids_arr = ids.reshape(n, 1)
        ids_spec = pl.BlockSpec((tile_n, 1), lambda i: (i, 0))                 # VMEM
        flops = 2 * n * e * v
    else:
        kernel = _embedding_gather_kernel
        ids_arr = ids
        ids_spec = pl.BlockSpec((tile_n,), lambda i: (i,),
                                memory_space=pltpu.MemorySpace.SMEM)           # SMEM
        flops = 0

    out = pl.pallas_call(
        kernel,
        out_shape=jax.ShapeDtypeStruct((n, v), jnp.float32),
        grid_spec=pltpu.PrefetchScalarGridSpec(
            num_scalar_prefetch=0,
            grid=grid,
            in_specs=[
                ids_spec,
                pl.BlockSpec((e, v), lambda i: (0, 0)),   # resident folded table
            ],
            out_specs=pl.BlockSpec((tile_n, v), lambda i: (i, 0)),
        ),
        compiler_params=pltpu.CompilerParams(
            dimension_semantics=("parallel",),             # megacore on v7x
            vmem_limit_bytes=vmem_bytes,
        ),
        cost_estimate=pl.CostEstimate(
            flops=flops,
            transcendentals=0,
            bytes_accessed=4 * (n * v + e * v + n),
        ),
    )(ids_arr, w_eff)

    return out.reshape(b, c, s, v)


if __name__ == "__main__":
    NUM_EMBEDDINGS = 8      # token-table rows; also the required seq_len (torch shape constraint)
    VOCAB_SIZE = 128        # embedding dim (the module names it `vocab_size`)
    B, C, S = 2, 4, NUM_EMBEDDINGS

    key = jax.random.PRNGKey(0)
    k_tok, k_x = jax.random.split(key)

    # nn.Embedding default init ~ N(0, 1); PositionalEmbedding weight = ones(V, E).
    w_tok = jax.random.normal(k_tok, (NUM_EMBEDDINGS, VOCAB_SIZE), dtype=jnp.float32)
    w_pos = jnp.ones((VOCAB_SIZE, NUM_EMBEDDINGS), dtype=jnp.float32)
    x = jax.random.randint(k_x, (B, C, S), 0, NUM_EMBEDDINGS, dtype=jnp.int32)

    # Small tile so the demo exercises a multi-step grid (N = 64 rows -> grid of 4).
    out = jax.block_until_ready(embedding_forward(x, w_tok, w_pos, tile_n=16))

    # Plain-JAX reference for the same semantics.
    pos_ref = jnp.arange(S, dtype=jnp.float32) @ w_pos.T     # (V,)
    ref = w_tok[x] + pos_ref                                  # (B, C, S, V)
    assert out.shape == (B, C, S, VOCAB_SIZE)
    assert jnp.allclose(out, ref, atol=1e-3, rtol=1e-3), float(jnp.max(jnp.abs(out - ref)))
    print("KERNEL_OK")
</pallas_src>

<mosaic_0001>
module attributes {stable_mosaic.version = 11 : i64} {
  func.func @_embedding_onehot_kernel(%arg0: i32, %arg1: memref<16x1xi32, #tpu.memory_space<vmem>>, %arg2: memref<8x128xf32, #tpu.memory_space<vmem>>, %arg3: memref<16x128xf32, #tpu.memory_space<vmem>>) attributes {dimension_semantics = [#tpu.dimension_semantics<parallel>], iteration_bounds = array<i64: 4>, scalar_prefetch = 0 : i64, scratch_operands = 0 : i64, tpu.core_type = #tpu.core_type<tc>, window_params = [{transform_indices = @transform_0, window_bounds = array<i64: 16, 1>}, {pipeline_mode = #tpu.pipeline_mode<synchronous>, transform_indices = @transform_1, window_bounds = array<i64: 8, 128>}, {transform_indices = @transform_2, window_bounds = array<i64: 16, 128>}]} {
    %c0 = arith.constant 0 : index
    %c0_0 = arith.constant 0 : index
    %0 = vector.load %arg1[%c0, %c0_0] : memref<16x1xi32, #tpu.memory_space<vmem>>, vector<16x1xi32>
    %1 = tpu.iota {dimensions = array<i32: 1>} : vector<16x8xi32>
    %2 = vector.broadcast %0 : vector<16x1xi32> to vector<16x8xi32>
    %3 = arith.cmpi eq, %1, %2 : vector<16x8xi32>
    %4 = arith.extui %3 : vector<16x8xi1> to vector<16x8xi32>
    %5 = arith.sitofp %4 : vector<16x8xi32> to vector<16x8xf32>
    %c0_1 = arith.constant 0 : index
    %c0_2 = arith.constant 0 : index
    %6 = vector.load %arg2[%c0_1, %c0_2] : memref<8x128xf32, #tpu.memory_space<vmem>>, vector<8x128xf32>
    %cst = arith.constant dense<0.000000e+00> : vector<16x128xf32>
    %7 = tpu.matmul %5, %6, %cst {dimension_numbers = #tpu.dot_dimension_numbers<[1], [0], [0], [1], [0, 0, 1, 1], [], []>} : vector<16x8xf32>, vector<8x128xf32>, vector<16x128xf32> -> vector<16x128xf32>
    %c0_3 = arith.constant 0 : index
    %c0_4 = arith.constant 0 : index
    %8 = vector.load %arg3[%c0_3, %c0_4] : memref<16x128xf32, #tpu.memory_space<vmem>>, vector<16x128xf32>
    tpu.vector_store %arg3[%c0_3, %c0_4], %7 {strides = array<i32>} : memref<16x128xf32, #tpu.memory_space<vmem>>, vector<16x128xf32>,
    return
  }
  func.func @transform_0(%arg0: i32) -> (i32, i32) {
    %c0_i32 = arith.constant 0 : i32
    %c0_i32_0 = arith.constant 0 : i32
    return %arg0, %c0_i32 : i32, i32
  }
  func.func @transform_1(%arg0: i32) -> (i32, i32) {
    %c0_i32 = arith.constant 0 : i32
    %c0_i32_0 = arith.constant 0 : i32
    %c0_i32_1 = arith.constant 0 : i32
    return %c0_i32, %c0_i32_0 : i32, i32
  }
  func.func @transform_2(%arg0: i32) -> (i32, i32) {
    %c0_i32 = arith.constant 0 : i32
    %c0_i32_0 = arith.constant 0 : i32
    return %arg0, %c0_i32 : i32, i32
  }
}

</mosaic_0001>

<bundles_post_ra>
// kernel: tpu_custom_call.1
= control target key start
LH: loop header
LB: loop body
LE: loop exit
PB: predicated region body
PF: predicated region fallthrough
CT: control target
= control target key end

     0   :  { %7 = vsyncpa [#allocation3], 0  ;;  %s504_s0 = inlined_call_operand.vmem [shape: s32[64,1], index: 0, kind: input, shape index: {}]   ;;  %s505_s1 = inlined_call_operand.vmem [shape: f32[8,128], index: 1, kind: input, shape index: {}]   ;;  %s506_s2 = inlined_call_operand.hbm [shape: f32[64,128], index: 2, kind: output, shape index: {}]  }
   0x1   :  { %9 = vsyncpa [#allocation3 + $0x1], 0  ;;  %s417_s9 = smov 0   ;;  %s419_s10 = smov 0  }
   0x2   :  { %s421_s11 = smov 0   ;;  %s423_s12 = smov 0  }
   0x3 LB: > { %s438_s13 = sadd.s32 4294967295, %s396_s12   ;;  %s272_s14 = sadd.s32 4294967294, %s396_s12   ;;  %s396_s12 = sphi %s423_s12, %s512_s12   ;;  %s392_s11 = sphi %s421_s11, %s511_s11   ;;  %s388_s10 = sphi %s419_s10, %s510_s10   ;;  %s384_s9 = sphi %s417_s9, %s509_s9  }
   0x4   : > { %s442_s15 = sadd.s32 1, %s396_s12   ;;  %s69_s16 = sadd.s32 1, %s392_s11 }
   0x5   : > { %s66_s17 = ssub.s32 %s396_s12, %s442_s15  ;;  %p79_p0 = scmp.ne.s32.totalorder %s392_s11, %s388_s10 }
   0x6   : > { %p67_p1 = scmp.eq.s32.totalorder %s66_s17, 0  ;;  %p80_p2 = scmp.eq.s32.totalorder %s438_s13, 3 }
   0x7   : > { %p85_p3 = scmp.ne.s32.totalorder %s388_s10, %s384_s9  ;;  %p86_p4 = scmp.eq.s32.totalorder %s272_s14, 3 }
   0x8   : > { %s453_s18 = scalar_select %p67_p1, %s392_s11, %s69_s16  }
   0x9   : > { %p455_p5 = por %p80_p2, %p79_p0  ;;  %p459_p6 = por %p86_p4, %p85_p3 }
   0xa   : > { %p275_p7 = scmp.ge.s32.totalorder %s396_s12, 1  ;;  %p116_p8 = scmp.lt.s32.totalorder %s396_s12, 5 }
   0xc   : > { %p117_p9 = pnand %p275_p7, %p116_p8 }
   0xd   : > { %s277_s21 = sshll.u32 (!%p117_p9), %s438_s13, 1  ;;  %s135_s28 = sand.u32 (!%p117_p9), 1, %s388_s10  }
   0xe   : > { %120 = sbr.rel (%p117_p9) target bundleno = 278 (0x116), region = 28  ;;  %p139_p10 = scmp.lt.s32.totalorder (!%p117_p9), %s277_s21, 7 }
   0xf   : > { %s276_s29 = sshll.u32 (!%p117_p9), %s135_s28, 4  ;;  %s288_s30 = sshll.u32 (!%p117_p9), %s438_s13, 4 }
  0x10   : > { %s206_s5 = scalar_lea.hbm (!%p117_p9), %s506_s2, %s288_s30  ;;  %s137_s6 = scalar_lea.vmem (!%p117_p9), [#allocation2], %s276_s29 }
  0x11   : > { %s207_s7 = sshll.u32 (!%p117_p9), %s137_s6, 4  ;;  %s209_s8 = sshll.u32 (!%p117_p9), %s206_s5, 4  ;;  %s208_s7 = int_to_ptr.vmem [resolvable:$true] %s207_s7  ;;  %s210_s8 = int_to_ptr.hbm [resolvable:$true] %s209_s8 }
  0x12   : > { %s195_s14 = scalar_lea.sflag (!%p117_p9), [#allocation3], %s135_s28  ;;  %s348_s16 = sshra.s32 (!%p117_p9), %s210_s8, 4  ;;  %s349_s16 = int_to_ptr.hbm [resolvable:$true] %s348_s16 }
  0x13   : > { %v398_v0 = vmov 0   ;;  %s514_s21 = smov (!%p139_p10, %s277_s21), 7  ;;  %v161_v3 = vld [vmem:[%s505_s1] sm:$0xff]  ;;  %v147_v4 = vlaneseq  ;;  %vm162_vm0 = vcmask 64512   ;;  %v399_v7 = vmov 0.0   ;;  %s350_s17 = scalar_lea.hbm %s349_s16, 16 }
  0x14   : > { %333 = vset.pattern.permute.xlu0 %v398_v0  ;;  %s278_s22 = sshll.u32 %s514_s21, 3  ;;  %184 = vmatpush.msra.mxu0 %v161_v3  ;;  %p351_p11 = scmp.ne.s32.totalorder %s349_s16, %s350_s17 }
  0x15   : > { %s142_s25 = scalar_lea.vmem %s504_s0, %s278_s22  ;;  %289 = vmatpush.msra.mxu1 %v161_v3  ;;  %v148_v5 = vand.u32 127, %v147_v4  ;;  %s354_s22 = scalar_lea.hbm %s506_s2, 64 }
  0x16   : > { %v145_v1 = vld [vmem:[%s142_s25] sm:$0xff]  ;;  %v146_v2 = vld [vmem:[%s142_s25 + $0x8] sm:$0xff]  ;;  %p352_p12 = pnand %p351_p11, %p455_p5  ;;  %p355_p0 = scmp.lt.s32.totalorder %s349_s16, %s506_s2 }
  0x17   : > { %150 = vperm.xlu0 %333, %v145_v1   ;;  %p356_p1 = scmp.lt.s32.totalorder %s354_s22, %s350_s17 }
  0x18   : > { %p353_p13 = pneg %p352_p12 }
  0x19   : > { %p357_p2 = por %p356_p1, %p355_p0 }
  0x1b   : > { %p358_p3 = pnand %p357_p2, %p353_p13 }
  0x1f   : > { %153 = vperm.xlu0 %333, %v146_v2  }
  0x89   : > { %v151_v6 = vpop.permute.xlu0 %150 }
  0x8a   : > { %vm155_vm1 = vcmp.eq.s32.totalorder %v148_v5, %v151_v6 }
  0x8b   : > { %v279_v8 = vsel %vm155_vm1, 1.0, %v399_v7 }
  0x8c   : > { %281 = vmatmul.msk.f32.vlgmr.msra.gmra.mxu0 %vm162_vm0, %v279_v8 }
  0x91   : > { %v154_v9 = vpop.permute.xlu0 %153 }
  0x92   : > { %vm156_vm2 = vcmp.eq.s32.totalorder %v148_v5, %v154_v9 }
  0x93   : > { %v280_v10 = vsel %vm156_vm2, 1.0, %v399_v7 }
  0x94   : > { %282 = vmatmul.msk.f32.vlgmr.msra.gmra.mxu1 %vm162_vm0, %v280_v10 }
 0x109   : > { %v186_v11 = vpop.f32.mrf.mxu0 }
 0x10a   : > { %192 = vst [vmem:[%s137_s6] sm:$0xff] %v186_v11 }
 0x111   : > { %v189_v12 = vpop.f32.mrf.mxu1 }
 0x112   : > { %193 = vst [vmem:[%s137_s6 + $0x8] sm:$0xff] %v189_v12 }
 0x113   : > { %361 = shalt.err (!%p358_p3)
}
 0x114   : > { %s400_s25 = smov 128   ;;  %s401_s26 = smov 8  }
 0x115   : > { %290 = dma.vmem_to_hbm [thread:$0]  (%p455_p5), %s208_s7, 256, %s210_s8, %s195_s14, %s400_s25, %s400_s25, %s401_s26  }
 0x116 PF: > { %p296_p4 = scmp.ge.s32.totalorder %s396_s12, 2  ;;  %s224_s27 = sand.u32 1, %s384_s9  }
 0x117   : > { %s225_s28 = scalar_lea.sflag [#allocation3], %s224_s27 }
 0x118   : > { %p293_p7 = pnand %p296_p4, %p459_p6 }
 0x11a   : > { %p294_p8 = pneg %p293_p7 }
 0x11c   : > { %379 = dma.done.wait (%p294_p8), %s225_s28, 256  }
 0x11d   : > { %381 = vsyncadd (%p294_p8), %s225_s28, 4294967040  ;;  %p12_p9 = scmp.ge.s32.totalorder %s442_s15, 6   ;;  %s509_s9 = smov %s388_s10 }
 0x11e   : > { %s510_s10 = smov %s392_s11  ;;  %s511_s11 = smov %s453_s18 }
 0x11f   : > { %s512_s12 = smov %s442_s15  ;;  %14 = sbr.rel (!%p12_p9) target bundleno = 3 (0x3), region = 63 }
 0x124   :  { %231 = vsyncpa [#allocation3], 1 }
 0x125   :  { %233 = vsyncpa [#allocation3 + $0x1], 1 }

</bundles_post_ra>
